<compile_context>
chip_gen: v7x
topology: tpu7x:2x2x1
jax: 0.10.0
libtpu: 0.0.40
codegen_flags: <defaults>
</compile_context>

<pallas_src>
import functools
import math

import jax
import jax.numpy as jnp
import numpy as np
from jax import lax
from jax.experimental import pallas as pl
from jax.experimental.pallas import tpu as pltpu


def _round_up(x, m):
    return (x + m - 1) // m * m


def _resident_spec(block_shape, index_map):
    """BlockSpec for a grid-invariant operand: request a single pipeline buffer
    (its index_map is constant, so a second buffer would never be refilled).
    Falls back to a regular spec if this jax version lacks `pipeline_mode`."""
    try:
        return pl.BlockSpec(block_shape, index_map, pipeline_mode=pl.Buffered(1))
    except (TypeError, AttributeError):
        return pl.BlockSpec(block_shape, index_map)


# ---------------------------------------------------------------------------
# Kernel 1: fused QKV projection  (rows, H) @ (H, 3H) + bias
# ---------------------------------------------------------------------------
def _qkv_proj_kernel(x_ref, w_ref, b_ref, qkv_ref):
    x = x_ref[...]                                            # (TM, H)
    acc = jnp.dot(x, w_ref[...], preferred_element_type=jnp.float32)
    acc = acc + b_ref[...].astype(jnp.float32)                # broadcast (1, 3H)
    qkv_ref[...] = acc.astype(qkv_ref.dtype)


def _qkv_projection(x2d, w_qkv, b_qkv, *, tm):
    R, H = x2d.shape
    H3 = w_qkv.shape[1]
    itemsize = x2d.dtype.itemsize
    cost = pl.CostEstimate(
        flops=2 * R * H * H3,
        transcendentals=0,
        bytes_accessed=itemsize * (R * H + H * H3 + H3 + R * H3),
    )
    return pl.pallas_call(
        _qkv_proj_kernel,
        out_shape=jax.ShapeDtypeStruct((R, H3), x2d.dtype),
        grid=(R // tm,),
        in_specs=[
            pl.BlockSpec((tm, H), lambda i: (i, 0)),
            _resident_spec((H, H3), lambda i: (0, 0)),        # grid-invariant weight
            _resident_spec((1, H3), lambda i: (0, 0)),        # grid-invariant bias
        ],
        out_specs=pl.BlockSpec((tm, H3), lambda i: (i, 0)),
        compiler_params=pltpu.CompilerParams(
            dimension_semantics=("parallel",)),
        cost_estimate=cost,
    )(x2d, w_qkv, b_qkv)


# ---------------------------------------------------------------------------
# Kernel 2: flash-style attention over one (batch, head, q-block) per step,
# kv blocks innermost ("arbitrary") with an online softmax in VMEM scratch.
# ---------------------------------------------------------------------------
def _flash_attn_kernel(q_ref, kt_ref, v_ref, o_ref, m_sc, l_sc, acc_sc, *,
                       scale, seq_len, s_padded, tk, approx_recip):
    ki = pl.program_id(3)

    @pl.when(ki == 0)
    def _():
        m_sc[...] = jnp.full_like(m_sc, -jnp.inf)
        l_sc[...] = jnp.zeros_like(l_sc)
        acc_sc[...] = jnp.zeros_like(acc_sc)

    q = q_ref[0, 0] * scale                                   # (TQ, hd), 1/sqrt(hd) folded in
    kt = kt_ref[0, 0]                                         # (hd, TK)
    v = v_ref[0, 0]                                           # (TK, hd)

    s = jnp.dot(q, kt, preferred_element_type=jnp.float32)    # (TQ, TK) f32

    if seq_len != s_padded:                                   # static: mask padded keys only
        key_idx = ki * tk + lax.broadcasted_iota(jnp.int32, s.shape, 1)
        s = jnp.where(key_idx < seq_len, s, -jnp.inf)

    m_prev = m_sc[...]
    m_new = jnp.maximum(m_prev, jnp.max(s, axis=-1, keepdims=True))
    alpha = jnp.exp(m_prev - m_new)
    p = jnp.exp(s - m_new)                                    # f32 softmax math (v5e-safe)

    l_sc[...] = alpha * l_sc[...] + jnp.sum(p, axis=-1, keepdims=True)
    acc_sc[...] = acc_sc[...] * alpha
    acc_sc[...] += jnp.dot(p.astype(v.dtype), v,
                           preferred_element_type=jnp.float32)
    m_sc[...] = m_new

    @pl.when(ki == pl.num_programs(3) - 1)
    def _():
        inv_l = pl.reciprocal(l_sc[...], approx=approx_recip)
        o_ref[0, 0] = (acc_sc[...] * inv_l).astype(o_ref.dtype)


def _flash_attention(q, kt, v, *, seq_len, tq, tk, approx_recip):
    B, nh, s_padded, hd = q.shape
    scale = 1.0 / math.sqrt(hd)

    kernel = functools.partial(
        _flash_attn_kernel, scale=scale, seq_len=seq_len, s_padded=s_padded,
        tk=tk, approx_recip=approx_recip)

    itemsize = q.dtype.itemsize
    cost = pl.CostEstimate(
        flops=4 * B * nh * s_padded * s_padded * hd,
        transcendentals=B * nh * s_padded * s_padded,
        bytes_accessed=itemsize * 4 * B * nh * s_padded * hd,   # q,k,v in + ctx out
    )

    return pl.pallas_call(
        kernel,
        out_shape=jax.ShapeDtypeStruct((B, nh, s_padded, hd), q.dtype),
        grid=(B, nh, s_padded // tq, s_padded // tk),
        in_specs=[
            pl.BlockSpec((1, 1, tq, hd), lambda b, h, qi, ki: (b, h, qi, 0)),
            pl.BlockSpec((1, 1, hd, tk), lambda b, h, qi, ki: (b, h, 0, ki)),
            pl.BlockSpec((1, 1, tk, hd), lambda b, h, qi, ki: (b, h, ki, 0)),
        ],
        out_specs=pl.BlockSpec((1, 1, tq, hd), lambda b, h, qi, ki: (b, h, qi, 0)),
        scratch_shapes=[
            pltpu.VMEM((tq, 1), jnp.float32),    # running max
            pltpu.VMEM((tq, 1), jnp.float32),    # running denom
            pltpu.VMEM((tq, hd), jnp.float32),   # f32 accumulator
        ],
        compiler_params=pltpu.CompilerParams(
            dimension_semantics=("parallel", "parallel", "parallel", "arbitrary")),
        cost_estimate=cost,
    )(q, kt, v)


# ---------------------------------------------------------------------------
# Wrapper: pad / fuse weights / head relayouts (XLA-side layout plumbing).
# ---------------------------------------------------------------------------
def self_attention(hidden_states, params, return_state, num_heads):
    """Pallas implementation of SelfAttention.forward.

    Returns (context_layer (B, S, H), return_layer (B, nh, S, hd))."""
    if return_state not in ('q', 'k', 'v'):
        raise ValueError(
            "Only 'q', 'k', 'v' values are permitted for lateral connections")

    B, S, H = hidden_states.shape
    hd = H // num_heads
    dtype = hidden_states.dtype
    wq, bq, wk, bk, wv, bv = params

    # Fuse + pre-transpose the three Linear weights to (in, out) and cast to
    # the activation dtype so both MXU operands match (bf16 stays bf16).
    w_qkv = jnp.concatenate([wq.T, wk.T, wv.T], axis=1).astype(dtype)   # (H, 3H)
    b_qkv = jnp.concatenate([bq, bk, bv], axis=1).astype(dtype)         # (1, 3H)

    # Pad the sequence to a multiple of 128 -> lane-dense, unmasked tiles.
    s_padded = _round_up(S, 128)
    x = hidden_states
    if s_padded != S:
        x = jnp.pad(x, ((0, 0), (0, s_padded - S), (0, 0)))

    # ---- Kernel 1: fused QKV projection on row tiles of (B*S_pad, H) -------
    rows = B * s_padded
    tm = next(c for c in (512, 256, 128) if rows % c == 0)
    qkv = _qkv_projection(x.reshape(rows, H), w_qkv, b_qkv, tm=tm)      # (rows, 3H)

    # Head split outside the kernels (cheap XLA relayout, keeps kernel tiles
    # lane-dense and avoids per-head gathers/scatters inside the kernel).
    qkv = qkv.reshape(B, s_padded, 3, num_heads, hd)
    q = qkv[:, :, 0].transpose(0, 2, 1, 3)          # (B, nh, S_pad, hd)
    kt = qkv[:, :, 1].transpose(0, 2, 3, 1)         # (B, nh, hd, S_pad) pre-transposed
    v = qkv[:, :, 2].transpose(0, 2, 1, 3)          # (B, nh, S_pad, hd)

    if return_state == 'q':
        ret = q
    elif return_state == 'k':
        ret = qkv[:, :, 1].transpose(0, 2, 1, 3)
    else:
        ret = v
    ret = ret[:, :, :S, :]                          # trim padded query rows

    # ---- Kernel 2: flash attention ------------------------------------------
    tq = 256 if s_padded % 256 == 0 else 128        # long M per head for the MXU
    tk = 128
    approx_recip = bool(np.dtype(dtype) != np.dtype(np.float32))
    ctx = _flash_attention(q, kt, v, seq_len=S, tq=tq, tk=tk,
                           approx_recip=approx_recip)           # (B, nh, S_pad, hd)

    # Merge heads -> (B, S, H) and trim the padding.
    ctx = ctx.transpose(0, 2, 1, 3).reshape(B, s_padded, H)[:, :S, :]
    return ctx, ret


# ---------------------------------------------------------------------------
# Pure-JAX reference mirroring the PyTorch module exactly.
# ---------------------------------------------------------------------------
def _reference(hidden_states, params, return_state, num_heads):
    B, S, H = hidden_states.shape
    hd = H // num_heads
    wq, bq, wk, bk, wv, bv = params

    def linear(x, w, b):
        return x @ w.T + b[0]

    def split_heads(t):  # (B,S,H) -> (B,nh,S,hd)
        return t.reshape(B, S, num_heads, hd).transpose(0, 2, 1, 3)

    q = split_heads(linear(hidden_states, wq, bq))
    k = split_heads(linear(hidden_states, wk, bk))
    v = split_heads(linear(hidden_states, wv, bv))

    ret = {'q': q, 'k': k, 'v': v}[return_state]

    scores = jnp.einsum('bhqd,bhkd->bhqk', q, k) / math.sqrt(hd)
    probs = jax.nn.softmax(scores, axis=-1)
    ctx = jnp.einsum('bhqk,bhkd->bhqd', probs, v)
    ctx = ctx.transpose(0, 2, 1, 3).reshape(B, S, H)
    return ctx, ret


if __name__ == "__main__":
    # ViT-ish small config
    batch, seq, hidden, num_heads = 2, 8, 32, 4

    key = jax.random.PRNGKey(0)
    kx, kwq, kbq, kwk, kbk, kwv, kbv = jax.random.split(key, 7)

    hidden_states = jax.random.normal(kx, (batch, seq, hidden), jnp.float32)

    # Deterministic nn.Linear-style parameters: weight (out, in), bias (1, out)
    bound = 1.0 / math.sqrt(hidden)
    params = (
        jax.random.uniform(kwq, (hidden, hidden), jnp.float32, -bound, bound),
        jax.random.uniform(kbq, (1, hidden), jnp.float32, -bound, bound),
        jax.random.uniform(kwk, (hidden, hidden), jnp.float32, -bound, bound),
        jax.random.uniform(kbk, (1, hidden), jnp.float32, -bound, bound),
        jax.random.uniform(kwv, (hidden, hidden), jnp.float32, -bound, bound),
        jax.random.uniform(kbv, (1, hidden), jnp.float32, -bound, bound),
    )

    for return_state in ('q', 'k', 'v'):
        ctx, ret = self_attention(hidden_states, params, return_state, num_heads)
        jax.block_until_ready((ctx, ret))

        ctx_ref, ret_ref = _reference(hidden_states, params, return_state,
                                      num_heads)
        np.testing.assert_allclose(np.asarray(ctx), np.asarray(ctx_ref),
                                   rtol=1e-4, atol=1e-5)
        np.testing.assert_allclose(np.asarray(ret), np.asarray(ret_ref),
                                   rtol=1e-4, atol=1e-5)

    print("KERNEL_OK")
</pallas_src>

<mosaic_0001>
module attributes {stable_mosaic.version = 11 : i64} {
  func.func @_qkv_proj_kernel(%arg0: i32, %arg1: memref<256x32xf32, #tpu.memory_space<vmem>>, %arg2: memref<32x96xf32, #tpu.memory_space<vmem>>, %arg3: memref<1x96xf32, #tpu.memory_space<vmem>>, %arg4: memref<256x96xf32, #tpu.memory_space<vmem>>) attributes {dimension_semantics = [#tpu.dimension_semantics<parallel>], iteration_bounds = array<i64: 1>, scalar_prefetch = 0 : i64, scratch_operands = 0 : i64, tpu.core_type = #tpu.core_type<tc>, window_params = [{transform_indices = @transform_0, window_bounds = array<i64: 256, 32>}, {pipeline_mode = #tpu.pipeline_mode<synchronous>, transform_indices = @transform_1, window_bounds = array<i64: 32, 96>}, {pipeline_mode = #tpu.pipeline_mode<synchronous>, transform_indices = @transform_2, window_bounds = array<i64: 1, 96>}, {transform_indices = @transform_3, window_bounds = array<i64: 256, 96>}]} {
    %c0 = arith.constant 0 : index
    %c0_0 = arith.constant 0 : index
    %0 = vector.load %arg1[%c0, %c0_0] : memref<256x32xf32, #tpu.memory_space<vmem>>, vector<256x32xf32>
    %c0_1 = arith.constant 0 : index
    %c0_2 = arith.constant 0 : index
    %1 = vector.load %arg2[%c0_1, %c0_2] : memref<32x96xf32, #tpu.memory_space<vmem>>, vector<32x96xf32>
    %cst = arith.constant dense<0.000000e+00> : vector<256x96xf32>
    %2 = tpu.matmul %0, %1, %cst {dimension_numbers = #tpu.dot_dimension_numbers<[1], [0], [0], [1], [0, 0, 1, 1], [], []>} : vector<256x32xf32>, vector<32x96xf32>, vector<256x96xf32> -> vector<256x96xf32>
    %c0_3 = arith.constant 0 : index
    %c0_4 = arith.constant 0 : index
    %3 = vector.load %arg3[%c0_3, %c0_4] : memref<1x96xf32, #tpu.memory_space<vmem>>, vector<1x96xf32>
    %4 = vector.broadcast %3 : vector<1x96xf32> to vector<256x96xf32>
    %5 = arith.addf %2, %4 : vector<256x96xf32>
    %c0_5 = arith.constant 0 : index
    %c0_6 = arith.constant 0 : index
    %6 = vector.load %arg4[%c0_5, %c0_6] : memref<256x96xf32, #tpu.memory_space<vmem>>, vector<256x96xf32>
    tpu.vector_store %arg4[%c0_5, %c0_6], %5 {strides = array<i32>} : memref<256x96xf32, #tpu.memory_space<vmem>>, vector<256x96xf32>,
    return
  }
  func.func @transform_0(%arg0: i32) -> (i32, i32) {
    %c0_i32 = arith.constant 0 : i32
    %c0_i32_0 = arith.constant 0 : i32
    return %arg0, %c0_i32 : i32, i32
  }
  func.func @transform_1(%arg0: i32) -> (i32, i32) {
    %c0_i32 = arith.constant 0 : i32
    %c0_i32_0 = arith.constant 0 : i32
    %c0_i32_1 = arith.constant 0 : i32
    return %c0_i32, %c0_i32_0 : i32, i32
  }
  func.func @transform_2(%arg0: i32) -> (i32, i32) {
    %c0_i32 = arith.constant 0 : i32
    %c0_i32_0 = arith.constant 0 : i32
    %c0_i32_1 = arith.constant 0 : i32
    return %c0_i32, %c0_i32_0 : i32, i32
  }
  func.func @transform_3(%arg0: i32) -> (i32, i32) {
    %c0_i32 = arith.constant 0 : i32
    %c0_i32_0 = arith.constant 0 : i32
    return %arg0, %c0_i32 : i32, i32
  }
}

</mosaic_0001>

<bundles_post_ra>
// kernel: tpu_custom_call.1
= control target key start
LH: loop header
LB: loop body
LE: loop exit
PB: predicated region body
PF: predicated region fallthrough
CT: control target
= control target key end

     0   :  { %vm57_vm0 = vcmask 261120   ;;  %vm379_vm1 = vcmask 785408   ;;  %s878_s1 = inlined_call_operand.vmem [shape: f32[32,96], index: 1, kind: input, shape index: {}]   ;;  %s879_s0 = inlined_call_operand.vmem [shape: f32[256,32], index: 0, kind: input, shape index: {}]   ;;  %s880_s2 = inlined_call_operand.vmem [shape: f32[1,96], index: 2, kind: input, shape index: {}]   ;;  %s881_s3 = inlined_call_operand.vmem [shape: f32[256,96], index: 3, kind: output, shape index: {}]  }
   0x1   :  { %v46_v0 = vld [vmem:[%s878_s1] sm:$0xff]  ;;  %v47_v1 = vld [vmem:[%s878_s1 + $0x8] sm:$0xff]  ;;  %v48_v2 = vld [vmem:[%s878_s1 + $0x10] sm:$0xff] }
   0x2   :  { %v541_v3 = vpack.c.bf16 %v47_v1, %v46_v0  ;;  %v49_v4 = vld [vmem:[%s878_s1 + $0x18] sm:$0xff]  ;;  %v14_v5 = vld [vmem:[%s879_s0] sm:$0xff]  ;;  %v15_v8 = vld [vmem:[%s879_s0 + $0x8] sm:$0xff] }
   0x3   :  { %v30_v6 = vld [vmem:[%s879_s0 + $0x80] sm:$0xff]  ;;  %v545_v7 = vpack.c.bf16 %v49_v4, %v48_v2  ;;  %493 = vmatprep.mubr.msk.f32.mxu0 %vm57_vm0, %v14_v5  ;;  %v31_v9 = vld [vmem:[%s879_s0 + $0x88] sm:$0xff]  ;;  %v16_v10 = vld [vmem:[%s879_s0 + $0x10] sm:$0xff] }
   0x4   :  { %517 = vmatprep.mubr.msk.f32.mxu1 %vm57_vm0, %v30_v6  ;;  %542 = vmatprep.subr.bf16.mxu0 %v541_v3  ;;  %v32_v11 = vld [vmem:[%s879_s0 + $0x90] sm:$0xff]  ;;  %v17_v12 = vld [vmem:[%s879_s0 + $0x18] sm:$0xff]  ;;  %v18_v14 = vld [vmem:[%s879_s0 + $0x20] sm:$0xff] }
   0x5   :  { %549 = vmatprep.subr.bf16.mxu1 %v541_v3  ;;  %544 = vmatpush3.bf16.msra.mxu0 %v541_v3  ;;  %v33_v13 = vld [vmem:[%s879_s0 + $0x98] sm:$0xff]  ;;  %v34_v15 = vld [vmem:[%s879_s0 + $0xa0] sm:$0xff]  ;;  %v19_v16 = vld [vmem:[%s879_s0 + $0x28] sm:$0xff] }
   0x6   :  { %551 = vmatpush3.bf16.msra.mxu1 %v541_v3  ;;  %546 = vmatprep.subr.bf16.mxu0 %v545_v7  ;;  %v35_v17 = vld [vmem:[%s879_s0 + $0xa8] sm:$0xff]  ;;  %v20_v18 = vld [vmem:[%s879_s0 + $0x30] sm:$0xff]  ;;  %v21_v20 = vld [vmem:[%s879_s0 + $0x38] sm:$0xff] }
   0x7   :  { %550 = vmatprep.subr.bf16.mxu1 %v545_v7  ;;  %v36_v19 = vld [vmem:[%s879_s0 + $0xb0] sm:$0xff]  ;;  %v37_v21 = vld [vmem:[%s879_s0 + $0xb8] sm:$0xff]  ;;  %v22_v22 = vld [vmem:[%s879_s0 + $0x40] sm:$0xff] }
   0x8   :  { %v38_v23 = vld [vmem:[%s879_s0 + $0xc0] sm:$0xff]  ;;  %v23_v24 = vld [vmem:[%s879_s0 + $0x48] sm:$0xff]  ;;  %v24_v26 = vld [vmem:[%s879_s0 + $0x50] sm:$0xff] }
   0x9   :  { %548 = vmatpush3.bf16.msra.mxu0 %v545_v7  ;;  %v39_v25 = vld [vmem:[%s879_s0 + $0xc8] sm:$0xff]  ;;  %v40_v27 = vld [vmem:[%s879_s0 + $0xd0] sm:$0xff]  ;;  %v25_v28 = vld [vmem:[%s879_s0 + $0x58] sm:$0xff] }
   0xa   :  { %552 = vmatpush3.bf16.msra.mxu1 %v545_v7  ;;  %v41_v29 = vld [vmem:[%s879_s0 + $0xd8] sm:$0xff]  ;;  %v26_v30 = vld [vmem:[%s879_s0 + $0x60] sm:$0xff]  ;;  %v27_v32 = vld [vmem:[%s879_s0 + $0x68] sm:$0xff] }
   0xb   :  { %v42_v31 = vld [vmem:[%s879_s0 + $0xe0] sm:$0xff]  ;;  %v43_v33 = vld [vmem:[%s879_s0 + $0xe8] sm:$0xff]  ;;  %v28_v34 = vld [vmem:[%s879_s0 + $0x70] sm:$0xff] }
   0xc   :  { %494 = vmatmul.mubr.msk.f32.vlgmr.msra.gmra.mrb[0].mxu0 %vm57_vm0, %v15_v8  ;;  %v44_v35 = vld [vmem:[%s879_s0 + $0xf0] sm:$0xff]  ;;  %v29_v36 = vld [vmem:[%s879_s0 + $0x78] sm:$0xff]  ;;  %v716_v38 = vld [vmem:[%s880_s2] ss:$0 sm:$0xff] }
   0xd   :  { %518 = vmatmul.mubr.msk.f32.vlgmr.msra.gmra.mrb[0].mxu1 %vm57_vm0, %v31_v9  ;;  %496 = vmatprep.mubr.msk.f32.mxu0 %vm57_vm0, %v16_v10  ;;  %v45_v37 = vld [vmem:[%s879_s0 + $0xf8] sm:$0xff] }
   0xe   :  { %520 = vmatprep.mubr.msk.f32.mxu1 %vm57_vm0, %v32_v11 }
  0x10   :  { %497 = vmatmul.mubr.msk.f32.gmra.mrb[2].mxu0 %vm57_vm0, %v17_v12 }
  0x11   :  { %521 = vmatmul.mubr.msk.f32.gmra.mrb[2].mxu1 %vm57_vm0, %v33_v13  ;;  %499 = vmatprep.mubr.msk.f32.mxu0 %vm57_vm0, %v18_v14 }
  0x12   :  { %523 = vmatprep.mubr.msk.f32.mxu1 %vm57_vm0, %v34_v15 }
  0x14   :  { %500 = vmatmul.mubr.msk.f32.gmra.mrb[4].mxu0 %vm57_vm0, %v19_v16 }
  0x15   :  { %524 = vmatmul.mubr.msk.f32.gmra.mrb[4].mxu1 %vm57_vm0, %v35_v17  ;;  %502 = vmatprep.mubr.msk.f32.mxu0 %vm57_vm0, %v20_v18 }
  0x16   :  { %526 = vmatprep.mubr.msk.f32.mxu1 %vm57_vm0, %v36_v19 }
  0x18   :  { %503 = vmatmul.mubr.msk.f32.gmra.mrb[6].mxu0 %vm57_vm0, %v21_v20 }
  0x19   :  { %527 = vmatmul.mubr.msk.f32.gmra.mrb[6].mxu1 %vm57_vm0, %v37_v21  ;;  %505 = vmatprep.mubr.msk.f32.mxu0 %vm57_vm0, %v22_v22 }
  0x1a   :  { %529 = vmatprep.mubr.msk.f32.mxu1 %vm57_vm0, %v38_v23 }
  0x1c   :  { %506 = vmatmul.mubr.msk.f32.gmra.mrb[8].mxu0 %vm57_vm0, %v23_v24 }
  0x1d   :  { %530 = vmatmul.mubr.msk.f32.gmra.mrb[8].mxu1 %vm57_vm0, %v39_v25  ;;  %508 = vmatprep.mubr.msk.f32.mxu0 %vm57_vm0, %v24_v26 }
  0x1e   :  { %532 = vmatprep.mubr.msk.f32.mxu1 %vm57_vm0, %v40_v27 }
  0x20   :  { %509 = vmatmul.mubr.msk.f32.gmra.mrb[10].mxu0 %vm57_vm0, %v25_v28 }
  0x21   :  { %533 = vmatmul.mubr.msk.f32.gmra.mrb[10].mxu1 %vm57_vm0, %v41_v29  ;;  %511 = vmatprep.mubr.msk.f32.mxu0 %vm57_vm0, %v26_v30 }
  0x22   :  { %535 = vmatprep.mubr.msk.f32.mxu1 %vm57_vm0, %v42_v31 }
  0x24   :  { %512 = vmatmul.mubr.msk.f32.gmra.mrb[12].mxu0 %vm57_vm0, %v27_v32 }
  0x25   :  { %536 = vmatmul.mubr.msk.f32.gmra.mrb[12].mxu1 %vm57_vm0, %v43_v33  ;;  %514 = vmatprep.mubr.msk.f32.mxu0 %vm57_vm0, %v28_v34 }
  0x26   :  { %538 = vmatprep.mubr.msk.f32.mxu1 %vm57_vm0, %v44_v35 }
  0x28   :  { %515 = vmatmul.mubr.msk.f32.gmra.mrb[14].mxu0 %vm57_vm0, %v29_v36 }
  0x29   :  { %539 = vmatmul.mubr.msk.f32.gmra.mrb[14].mxu1 %vm57_vm0, %v45_v37 }
  0xdf   :  { %v495_v39 = vpop.f32.mrb[0].mxu0 }
  0xe0   :  { %v519_v40 = vpop.f32.mrb[0].mxu1  ;;  %v226_v41 = vadd.f32 %v495_v39, %v716_v38  ;;  %v220_v43 = vpop.f32.mrb[1].mxu0 }
  0xe1   :  { %v306_v42 = vadd.f32 %v519_v40, %v716_v38  ;;  %v300_v44 = vpop.f32.mrb[1].mxu1  ;;  %v221_v45 = vadd.f32 %v716_v38, %v220_v43 }
  0xe2   :  { %v301_v46 = vadd.f32 %v716_v38, %v300_v44  ;;  %381 = vst.msk [vmem:[%s881_s3 + $0x8] sm:$0xff] %vm379_vm1, %v226_v41 }
  0xe3   :  { %397 = vst.msk [vmem:[%s881_s3 + $0x88] sm:$0xff] %vm379_vm1, %v306_v42  ;;  %380 = vst.msk [vmem:[%s881_s3] sm:$0xff] %vm379_vm1, %v221_v45  ;;  %v498_v47 = vpop.f32.mrb[2].mxu0 }
  0xe4   :  { %396 = vst.msk [vmem:[%s881_s3 + $0x80] sm:$0xff] %vm379_vm1, %v301_v46  ;;  %v522_v48 = vpop.f32.mrb[2].mxu1  ;;  %v236_v49 = vadd.f32 %v498_v47, %v716_v38  ;;  %v230_v51 = vpop.f32.mrb[3].mxu0 }
  0xe5   :  { %v316_v50 = vadd.f32 %v522_v48, %v716_v38  ;;  %v310_v52 = vpop.f32.mrb[3].mxu1  ;;  %v231_v53 = vadd.f32 %v716_v38, %v230_v51 }
  0xe6   :  { %v311_v54 = vadd.f32 %v716_v38, %v310_v52  ;;  %383 = vst.msk [vmem:[%s881_s3 + $0x18] sm:$0xff] %vm379_vm1, %v236_v49 }
  0xe7   :  { %399 = vst.msk [vmem:[%s881_s3 + $0x98] sm:$0xff] %vm379_vm1, %v316_v50  ;;  %382 = vst.msk [vmem:[%s881_s3 + $0x10] sm:$0xff] %vm379_vm1, %v231_v53  ;;  %v501_v55 = vpop.f32.mrb[4].mxu0 }
  0xe8   :  { %398 = vst.msk [vmem:[%s881_s3 + $0x90] sm:$0xff] %vm379_vm1, %v311_v54  ;;  %v525_v56 = vpop.f32.mrb[4].mxu1  ;;  %v246_v57 = vadd.f32 %v501_v55, %v716_v38  ;;  %v240_v59 = vpop.f32.mrb[5].mxu0 }
  0xe9   :  { %v326_v58 = vadd.f32 %v525_v56, %v716_v38  ;;  %v320_v60 = vpop.f32.mrb[5].mxu1  ;;  %v241_v61 = vadd.f32 %v716_v38, %v240_v59 }
  0xea   :  { %v321_v62 = vadd.f32 %v716_v38, %v320_v60  ;;  %385 = vst.msk [vmem:[%s881_s3 + $0x28] sm:$0xff] %vm379_vm1, %v246_v57 }
  0xeb   :  { %401 = vst.msk [vmem:[%s881_s3 + $0xa8] sm:$0xff] %vm379_vm1, %v326_v58  ;;  %384 = vst.msk [vmem:[%s881_s3 + $0x20] sm:$0xff] %vm379_vm1, %v241_v61  ;;  %v504_v63 = vpop.f32.mrb[6].mxu0 }
  0xec   :  { %400 = vst.msk [vmem:[%s881_s3 + $0xa0] sm:$0xff] %vm379_vm1, %v321_v62  ;;  %v528_v0 = vpop.f32.mrb[6].mxu1  ;;  %v256_v1 = vadd.f32 %v504_v63, %v716_v38  ;;  %v250_v3 = vpop.f32.mrb[7].mxu0 }
  0xed   :  { %v336_v2 = vadd.f32 %v528_v0, %v716_v38  ;;  %v330_v4 = vpop.f32.mrb[7].mxu1  ;;  %v251_v5 = vadd.f32 %v716_v38, %v250_v3 }
  0xee   :  { %v331_v6 = vadd.f32 %v716_v38, %v330_v4  ;;  %387 = vst.msk [vmem:[%s881_s3 + $0x38] sm:$0xff] %vm379_vm1, %v256_v1 }
  0xef   :  { %403 = vst.msk [vmem:[%s881_s3 + $0xb8] sm:$0xff] %vm379_vm1, %v336_v2  ;;  %386 = vst.msk [vmem:[%s881_s3 + $0x30] sm:$0xff] %vm379_vm1, %v251_v5  ;;  %v507_v7 = vpop.f32.mrb[8].mxu0 }
  0xf0   :  { %402 = vst.msk [vmem:[%s881_s3 + $0xb0] sm:$0xff] %vm379_vm1, %v331_v6  ;;  %v531_v8 = vpop.f32.mrb[8].mxu1  ;;  %v266_v9 = vadd.f32 %v507_v7, %v716_v38  ;;  %v260_v11 = vpop.f32.mrb[9].mxu0 }
  0xf1   :  { %v346_v10 = vadd.f32 %v531_v8, %v716_v38  ;;  %v340_v12 = vpop.f32.mrb[9].mxu1  ;;  %v261_v13 = vadd.f32 %v716_v38, %v260_v11 }
  0xf2   :  { %v341_v14 = vadd.f32 %v716_v38, %v340_v12  ;;  %389 = vst.msk [vmem:[%s881_s3 + $0x48] sm:$0xff] %vm379_vm1, %v266_v9 }
  0xf3   :  { %405 = vst.msk [vmem:[%s881_s3 + $0xc8] sm:$0xff] %vm379_vm1, %v346_v10  ;;  %388 = vst.msk [vmem:[%s881_s3 + $0x40] sm:$0xff] %vm379_vm1, %v261_v13  ;;  %v510_v15 = vpop.f32.mrb[10].mxu0 }
  0xf4   :  { %404 = vst.msk [vmem:[%s881_s3 + $0xc0] sm:$0xff] %vm379_vm1, %v341_v14  ;;  %v534_v16 = vpop.f32.mrb[10].mxu1  ;;  %v276_v17 = vadd.f32 %v510_v15, %v716_v38  ;;  %v270_v19 = vpop.f32.mrb[11].mxu0 }
  0xf5   :  { %v356_v18 = vadd.f32 %v534_v16, %v716_v38  ;;  %v350_v20 = vpop.f32.mrb[11].mxu1  ;;  %v271_v21 = vadd.f32 %v716_v38, %v270_v19 }
  0xf6   :  { %v351_v22 = vadd.f32 %v716_v38, %v350_v20  ;;  %391 = vst.msk [vmem:[%s881_s3 + $0x58] sm:$0xff] %vm379_vm1, %v276_v17 }
  0xf7   :  { %407 = vst.msk [vmem:[%s881_s3 + $0xd8] sm:$0xff] %vm379_vm1, %v356_v18  ;;  %390 = vst.msk [vmem:[%s881_s3 + $0x50] sm:$0xff] %vm379_vm1, %v271_v21  ;;  %v513_v23 = vpop.f32.mrb[12].mxu0 }
  0xf8   :  { %406 = vst.msk [vmem:[%s881_s3 + $0xd0] sm:$0xff] %vm379_vm1, %v351_v22  ;;  %v537_v24 = vpop.f32.mrb[12].mxu1  ;;  %v286_v25 = vadd.f32 %v513_v23, %v716_v38  ;;  %v280_v27 = vpop.f32.mrb[13].mxu0 }
  0xf9   :  { %v366_v26 = vadd.f32 %v537_v24, %v716_v38  ;;  %v360_v28 = vpop.f32.mrb[13].mxu1  ;;  %v281_v29 = vadd.f32 %v716_v38, %v280_v27 }
  0xfa   :  { %v361_v30 = vadd.f32 %v716_v38, %v360_v28  ;;  %393 = vst.msk [vmem:[%s881_s3 + $0x68] sm:$0xff] %vm379_vm1, %v286_v25 }
  0xfb   :  { %409 = vst.msk [vmem:[%s881_s3 + $0xe8] sm:$0xff] %vm379_vm1, %v366_v26  ;;  %392 = vst.msk [vmem:[%s881_s3 + $0x60] sm:$0xff] %vm379_vm1, %v281_v29  ;;  %v516_v31 = vpop.f32.mrb[14].mxu0 }
  0xfc   :  { %408 = vst.msk [vmem:[%s881_s3 + $0xe0] sm:$0xff] %vm379_vm1, %v361_v30  ;;  %v540_v32 = vpop.f32.mrb[14].mxu1  ;;  %v296_v33 = vadd.f32 %v516_v31, %v716_v38  ;;  %v290_v35 = vpop.f32.mrb[15].mxu0 }
  0xfd   :  { %v376_v34 = vadd.f32 %v540_v32, %v716_v38  ;;  %v370_v36 = vpop.f32.mrb[15].mxu1  ;;  %v291_v37 = vadd.f32 %v716_v38, %v290_v35 }
  0xfe   :  { %v371_v39 = vadd.f32 %v716_v38, %v370_v36  ;;  %395 = vst.msk [vmem:[%s881_s3 + $0x78] sm:$0xff] %vm379_vm1, %v296_v33 }
  0xff   :  { %411 = vst.msk [vmem:[%s881_s3 + $0xf8] sm:$0xff] %vm379_vm1, %v376_v34  ;;  %394 = vst.msk [vmem:[%s881_s3 + $0x70] sm:$0xff] %vm379_vm1, %v291_v37 }
 0x100   :  { %410 = vst.msk [vmem:[%s881_s3 + $0xf0] sm:$0xff] %vm379_vm1, %v371_v39 }

</bundles_post_ra>
